<compile_context>
chip_gen: v7x
topology: tpu7x:2x2x1
jax: 0.10.0
libtpu: 0.0.40
codegen_flags: <defaults>
</compile_context>

<pallas_src>
import functools

import jax
import jax.numpy as jnp
from jax import lax
from jax.experimental import pallas as pl
from jax.experimental.pallas import tpu as pltpu


def _round_up(v, m):
    return ((v + m - 1) // m) * m


@functools.lru_cache(maxsize=None)
def _budgets():
    """Returns (tile_target_bytes, vmem_limit_bytes, fused_max_bytes)."""
    try:
        cap = int(pltpu.get_tpu_info().vmem_capacity_bytes)
    except Exception:
        cap = 64 * 1024 * 1024          # conservative fallback (v7x-sized)
    if cap >= 100 * 1024 * 1024:        # v5e / v6e: 128 MiB physical VMEM
        return 12 << 20, 80 << 20, 12 << 20
    return 6 << 20, 44 << 20, 6 << 20   # v7x: 64 MiB physical VMEM per core


# ----------------- Fused path: whole x resident in VMEM (small/medium) --------
def _fused_kernel(scal_ref, x_ref, acc_sum_ref, acc_sq_ref,
                  y_ref, new_sum_ref, new_sq_ref):
    # scal_ref (SMEM f32[3]): [do_acc, new_count, std_epsilon]
    do_acc = scal_ref[0]
    new_count = scal_ref[1]
    std_eps = scal_ref[2]

    x = x_ref[...]                                     # [N, D] f32 (VMEM)
    total_sum = jnp.sum(x, axis=0, keepdims=True)      # [1, D]
    total_sq = jnp.sum(x * x, axis=0, keepdims=True)   # [1, D]

    new_sum = acc_sum_ref[...] + do_acc * total_sum
    new_sq = acc_sq_ref[...] + do_acc * total_sq

    safe = jnp.maximum(new_count, 1.0)
    mean = new_sum / safe
    var = jnp.abs(new_sq / safe - mean * mean)
    std = jnp.maximum(jnp.sqrt(var), std_eps)
    inv_std = 1.0 / std     # exact reciprocal on the tiny [1, D] stats row

    new_sum_ref[...] = new_sum
    new_sq_ref[...] = new_sq
    y_ref[...] = (x - mean) * inv_std


# ------------------- Phase A (two-phase path): partial sums -------------------
def _partial_stats_kernel(x_ref, psum_ref, psq_ref, *,
                          tb, chunk, n, tiles_per_core, mask):
    c = pl.program_id(0)          # core axis ("parallel"; sharded on v7x)
    i = pl.program_id(1)          # batch-tile axis ("arbitrary", reduction)

    @pl.when(i == 0)
    def _init():
        psum_ref[...] = jnp.zeros_like(psum_ref)
        psq_ref[...] = jnp.zeros_like(psq_ref)

    d = x_ref.shape[1]
    # Logical (UNclamped) row offset of this tile -- used only for masking.
    start = (c * tiles_per_core + i) * tb
    if mask:
        row_base = lax.broadcasted_iota(jnp.int32, (chunk, d), 0)

    # Chunked VPU accumulation: avoids a full-tile x*x temporary and keeps the
    # per-vreg load/store traffic well under the HBM DMA time (stays HBM-bound).
    @pl.loop(0, tb // chunk)
    def _acc(g):
        off = pl.multiple_of(g * chunk, chunk)
        xc = x_ref[pl.ds(off, chunk), :]
        if mask:
            limit = n - start - g * chunk          # rows beyond n are garbage
            xc = jnp.where(row_base < limit, xc, 0.0)
        xr = xc.reshape(chunk // 8, 8, d)
        psum_ref[0] += jnp.sum(xr, axis=0)         # pure sublane-group adds
        psq_ref[0] += jnp.sum(xr * xr, axis=0)


# ------------------------ Phase B (two-phase path): normalize -----------------
def _normalize_kernel(x_ref, mean_ref, inv_std_ref, y_ref):
    y_ref[...] = (x_ref[...] - mean_ref[...]) * inv_std_ref[...]


@functools.partial(jax.jit,
                   static_argnames=("accumulate", "tile_rows", "force_two_phase"))
def _normalizer_forward(x, acc_sum, acc_sq, acc_count, num_acc,
                        max_acc, std_eps, accumulate,
                        tile_rows=None, force_two_phase=False):
    n, d = x.shape
    x = x.astype(jnp.float32)
    std_eps = std_eps.astype(jnp.float32)

    if accumulate:
        do_acc = jnp.where(num_acc < max_acc, 1.0, 0.0).astype(jnp.float32)
    else:
        do_acc = jnp.float32(0.0)
    new_count = (acc_count + do_acc * jnp.float32(n)).astype(jnp.float32)
    new_num = (num_acc + do_acc).astype(jnp.float32)

    tile_target, vmem_limit, fused_max = _budgets()
    padded_bytes = _round_up(n, 8) * _round_up(d, 128) * 4

    # ------------------------ fused single-pass path -------------------------
    if (not force_two_phase) and padded_bytes <= fused_max:
        scalars = jnp.stack([do_acc, new_count, std_eps])
        stat_spec = pl.BlockSpec((1, d), lambda i: (0, 0))
        full_spec = pl.BlockSpec((n, d), lambda i: (0, 0))
        y, new_sum, new_sq = pl.pallas_call(
            _fused_kernel,
            grid=(1,),
            out_shape=(jax.ShapeDtypeStruct((n, d), jnp.float32),
                       jax.ShapeDtypeStruct((1, d), jnp.float32),
                       jax.ShapeDtypeStruct((1, d), jnp.float32)),
            in_specs=[pl.BlockSpec(memory_space=pltpu.MemorySpace.SMEM),
                      full_spec, stat_spec, stat_spec],
            out_specs=(full_spec, stat_spec, stat_spec),
            compiler_params=pltpu.CompilerParams(
                dimension_semantics=("arbitrary",),
                vmem_limit_bytes=vmem_limit),
        )(scalars, x, acc_sum, acc_sq)
        return y, new_sum, new_sq, new_count, new_num

    # --------------------------- two-phase tiled path ------------------------
    row_bytes = _round_up(d, 128) * 4
    if tile_rows is not None:
        tb = max(8, (int(tile_rows) // 8) * 8)
    else:
        tb = max(64, (tile_target // row_bytes) // 64 * 64)
        if tb * row_bytes > 2 * tile_target:       # pathologically wide features
            tb = max(8, (tile_target // row_bytes) // 8 * 8)
    tb = min(tb, _round_up(n, 8))
    chunk = 64 if (tb % 64 == 0) else 8

    n_tiles = -(-n // tb)
    n_cores = 2 if n_tiles >= 2 else 1             # shard Phase A on v7x
    tiles_per_core = -(-n_tiles // n_cores)
    mask = (n_cores * tiles_per_core * tb != n)    # any ragged / phantom rows?

    # Phantom tiles (when n_tiles is odd) clamp to the last real tile; their
    # rows are fully masked in-kernel via the UNclamped logical offset.
    x_map = lambda c, i, tpc=tiles_per_core, nt=n_tiles: (
        jnp.minimum(c * tpc + i, nt - 1), 0)

    psums, psqs = pl.pallas_call(
        functools.partial(_partial_stats_kernel, tb=tb, chunk=chunk, n=n,
                          tiles_per_core=tiles_per_core, mask=mask),
        grid=(n_cores, tiles_per_core),
        out_shape=(jax.ShapeDtypeStruct((n_cores, 8, d), jnp.float32),
                   jax.ShapeDtypeStruct((n_cores, 8, d), jnp.float32)),
        in_specs=[pl.BlockSpec((tb, d), x_map)],
        out_specs=(pl.BlockSpec((1, 8, d), lambda c, i: (c, 0, 0)),
                   pl.BlockSpec((1, 8, d), lambda c, i: (c, 0, 0))),
        compiler_params=pltpu.CompilerParams(
            dimension_semantics=("parallel", "arbitrary"),
            vmem_limit_bytes=vmem_limit),
    )(x)

    # Tiny [1, D] combine + stats math (hoisted off the NxD hot path).
    total_sum = jnp.sum(psums, axis=(0, 1))[None, :]
    total_sq = jnp.sum(psqs, axis=(0, 1))[None, :]
    new_sum = acc_sum + do_acc * total_sum
    new_sq = acc_sq + do_acc * total_sq
    safe = jnp.maximum(new_count, 1.0)
    mean = new_sum / safe
    var = jnp.abs(new_sq / safe - mean * mean)
    std = jnp.maximum(jnp.sqrt(var), std_eps)
    inv_std = 1.0 / std

    row_spec = pl.BlockSpec((tb, d), lambda i: (i, 0))
    stat_spec = pl.BlockSpec((1, d), lambda i: (0, 0))
    y = pl.pallas_call(
        _normalize_kernel,
        grid=(n_tiles,),
        out_shape=jax.ShapeDtypeStruct((n, d), jnp.float32),
        in_specs=[row_spec, stat_spec, stat_spec],
        out_specs=row_spec,     # partial last block: Pallas masks the store
        compiler_params=pltpu.CompilerParams(
            dimension_semantics=("parallel",),
            vmem_limit_bytes=vmem_limit),
    )(x, mean, inv_std)

    return y, new_sum, new_sq, new_count, new_num


class NormalizerPallas:
    """JAX/Pallas port of the online-statistics feature Normalizer."""

    def __init__(self, name, max_accumulations=10 ** 6, std_epsilon=1e-8):
        self._name = name
        self._max_accumulations = float(max_accumulations)
        self._std_epsilon = float(std_epsilon)
        self._acc_count = jnp.zeros((), jnp.float32)
        self._num_accumulations = jnp.zeros((), jnp.float32)
        self.initialized = False
        self._size = None
        self._acc_sum = None            # stored as [1, D]
        self._acc_sum_squared = None    # stored as [1, D]

    def initialize(self, size):
        self._size = int(size)
        self._acc_sum = jnp.zeros((1, self._size), jnp.float32)
        self._acc_sum_squared = jnp.zeros((1, self._size), jnp.float32)
        self.initialized = True

    def __call__(self, batched_data, accumulate=True):
        x = jnp.asarray(batched_data, jnp.float32)
        if not self.initialized:
            self.initialize(x.shape[1])
        y, new_sum, new_sq, new_count, new_num = _normalizer_forward(
            x, self._acc_sum, self._acc_sum_squared,
            self._acc_count, self._num_accumulations,
            jnp.float32(self._max_accumulations),
            jnp.float32(self._std_epsilon),
            accumulate=bool(accumulate))
        # Commit updated state (mirrors the in-place .add() of the PyTorch module).
        self._acc_sum = new_sum
        self._acc_sum_squared = new_sq
        self._acc_count = new_count
        self._num_accumulations = new_num
        return y

    forward = __call__

    def get_acc_sum(self):
        return self._acc_sum[0]

    def _mean_std(self):
        safe = jnp.maximum(self._acc_count, 1.0)
        mean = self._acc_sum[0] / safe
        std = jnp.maximum(
            jnp.sqrt(jnp.abs(self._acc_sum_squared[0] / safe - mean ** 2)),
            self._std_epsilon)
        return mean, std

    def inverse(self, normalized):
        mean, std = self._mean_std()
        return normalized * std + mean


def _reference_forward(x, acc_sum, acc_sq, acc_count, eps, accumulate=True):
    """Pure-JAX reference mirroring the PyTorch semantics."""
    if accumulate:
        acc_sum = acc_sum + jnp.sum(x, axis=0, keepdims=True)
        acc_sq = acc_sq + jnp.sum(x * x, axis=0, keepdims=True)
        acc_count = acc_count + x.shape[0]
    safe = jnp.maximum(acc_count, 1.0)
    mean = acc_sum / safe
    std = jnp.maximum(jnp.sqrt(jnp.abs(acc_sq / safe - mean ** 2)), eps)
    return (x - mean) / std, acc_sum, acc_sq, acc_count


if __name__ == "__main__":
    # TODO(synk): variance via E[x^2]-E[x]^2 mirrors the PyTorch reference; a
    # compensated/Welford update would be more robust for ~1e6 accumulations.
    key = jax.random.PRNGKey(0)
    k1, k2, k3, k4, k5, k6 = jax.random.split(key, 6)

    # ------------- small shapes: fused single-pass path ----------------------
    batch, features = 8, 32
    x1 = jax.random.normal(k1, (batch, features), jnp.float32) * 3.0 + 1.5
    x2 = jax.random.normal(k2, (batch, features), jnp.float32) * 0.5 - 2.0
    x3 = jax.random.normal(k3, (batch, features), jnp.float32)

    norm = NormalizerPallas("test_normalizer")
    y1 = norm(x1, accumulate=True)       # accumulate batch 1, then normalize
    y2 = norm(x2, accumulate=True)       # accumulate batch 2 on top of batch 1
    y3 = norm(x3, accumulate=False)      # normalize only, state unchanged
    jax.block_until_ready((y1, y2, y3))

    r_sum = jnp.zeros((1, features), jnp.float32)
    r_sq = jnp.zeros((1, features), jnp.float32)
    r_cnt = jnp.zeros((), jnp.float32)
    ref1, r_sum, r_sq, r_cnt = _reference_forward(x1, r_sum, r_sq, r_cnt, 1e-8)
    ref2, r_sum, r_sq, r_cnt = _reference_forward(x2, r_sum, r_sq, r_cnt, 1e-8)
    ref3, _, _, _ = _reference_forward(x3, r_sum, r_sq, r_cnt, 1e-8,
                                       accumulate=False)

    assert jnp.allclose(y1, ref1, atol=1e-5, rtol=1e-5)
    assert jnp.allclose(y2, ref2, atol=1e-5, rtol=1e-5)
    assert jnp.allclose(y3, ref3, atol=1e-5, rtol=1e-5)
    assert jnp.allclose(norm._acc_count, r_cnt)
    assert jnp.allclose(norm._num_accumulations, 2.0)
    assert jnp.allclose(norm._acc_sum, r_sum, atol=1e-5, rtol=1e-5)
    assert jnp.allclose(norm._acc_sum_squared, r_sq, atol=1e-4, rtol=1e-5)
    assert jnp.allclose(norm.inverse(y3), x3, atol=1e-4, rtol=1e-4)

    # Non-aligned small shapes (batch 13, features 50), fused path.
    b_odd, f_odd = 13, 50
    x_odd = jax.random.normal(k4, (b_odd, f_odd), jnp.float32) * 2.0 + 0.3
    norm2 = NormalizerPallas("odd_shapes")
    y_odd = norm2(x_odd, accumulate=True)
    jax.block_until_ready(y_odd)
    ref_odd, _, _, _ = _reference_forward(
        x_odd, jnp.zeros((1, f_odd), jnp.float32),
        jnp.zeros((1, f_odd), jnp.float32), jnp.zeros((), jnp.float32), 1e-8)
    assert y_odd.shape == (b_odd, f_odd)
    assert jnp.allclose(y_odd, ref_odd, atol=1e-5, rtol=1e-5)
    assert jnp.allclose(norm2._acc_count, float(b_odd))

    # ------ two-phase tiled path, forced with small tiles for coverage -------
    def run_two_phase(xv):
        dv = xv.shape[1]
        z = jnp.zeros((1, dv), jnp.float32)
        c0 = jnp.zeros((), jnp.float32)
        return _normalizer_forward(
            xv, z, z, c0, c0, jnp.float32(1e6), jnp.float32(1e-8),
            accumulate=True, tile_rows=64, force_two_phase=True)

    # (a) ragged batch & features: in-kernel masking + phantom-tile clamp
    #     (300 rows -> 5 tiles of 64 -> 2 cores x 3 tiles, one phantom tile).
    xa = jax.random.normal(k5, (300, 50), jnp.float32) * 1.7 + 0.4
    ya, sa, qa, ca, _ = run_two_phase(xa)
    jax.block_until_ready(ya)
    ref_a, rs_a, rq_a, _ = _reference_forward(
        xa, jnp.zeros((1, 50), jnp.float32), jnp.zeros((1, 50), jnp.float32),
        jnp.zeros((), jnp.float32), 1e-8)
    assert ya.shape == xa.shape
    assert jnp.allclose(ya, ref_a, atol=2e-5, rtol=1e-5)
    assert jnp.allclose(sa, rs_a, atol=1e-3, rtol=1e-5)
    assert jnp.allclose(qa, rq_a, atol=1e-3, rtol=1e-5)
    assert jnp.allclose(ca, 300.0)

    # (b) aligned, lane-dense shapes: unmasked fast path, even core split.
    xb = jax.random.normal(k6, (256, 128), jnp.float32) * 2.0 - 1.0
    yb, sb, qb, _, _ = run_two_phase(xb)
    jax.block_until_ready(yb)
    ref_b, rs_b, rq_b, _ = _reference_forward(
        xb, jnp.zeros((1, 128), jnp.float32), jnp.zeros((1, 128), jnp.float32),
        jnp.zeros((), jnp.float32), 1e-8)
    assert jnp.allclose(yb, ref_b, atol=2e-5, rtol=1e-5)
    assert jnp.allclose(sb, rs_b, atol=1e-3, rtol=1e-5)
    assert jnp.allclose(qb, rq_b, atol=1e-3, rtol=1e-5)

    print("KERNEL_OK")
</pallas_src>

<mosaic_0001>
module attributes {stable_mosaic.version = 11 : i64} {
  func.func @_fused_kernel(%arg0: i32, %arg1: memref<3xf32, #tpu.memory_space<smem>>, %arg2: memref<8x32xf32, #tpu.memory_space<vmem>>, %arg3: memref<1x32xf32, #tpu.memory_space<vmem>>, %arg4: memref<1x32xf32, #tpu.memory_space<vmem>>, %arg5: memref<8x32xf32, #tpu.memory_space<vmem>>, %arg6: memref<1x32xf32, #tpu.memory_space<vmem>>, %arg7: memref<1x32xf32, #tpu.memory_space<vmem>>) attributes {dimension_semantics = [#tpu.dimension_semantics<arbitrary>], iteration_bounds = array<i64: 1>, scalar_prefetch = 0 : i64, scratch_operands = 0 : i64, tpu.core_type = #tpu.core_type<tc>, window_params = [{transform_indices = @transform_0, window_bounds = array<i64: 3>}, {pipeline_mode = #tpu.pipeline_mode<synchronous>, transform_indices = @transform_1, window_bounds = array<i64: 8, 32>}, {pipeline_mode = #tpu.pipeline_mode<synchronous>, transform_indices = @transform_2, window_bounds = array<i64: 1, 32>}, {pipeline_mode = #tpu.pipeline_mode<synchronous>, transform_indices = @transform_3, window_bounds = array<i64: 1, 32>}, {pipeline_mode = #tpu.pipeline_mode<synchronous>, transform_indices = @transform_4, window_bounds = array<i64: 8, 32>}, {pipeline_mode = #tpu.pipeline_mode<synchronous>, transform_indices = @transform_5, window_bounds = array<i64: 1, 32>}, {pipeline_mode = #tpu.pipeline_mode<synchronous>, transform_indices = @transform_6, window_bounds = array<i64: 1, 32>}]} {
    %c0 = arith.constant 0 : index
    %0 = memref.load %arg1[%c0] : memref<3xf32, #tpu.memory_space<smem>>
    %c1 = arith.constant 1 : index
    %1 = memref.load %arg1[%c1] : memref<3xf32, #tpu.memory_space<smem>>
    %c2 = arith.constant 2 : index
    %2 = memref.load %arg1[%c2] : memref<3xf32, #tpu.memory_space<smem>>
    %c0_0 = arith.constant 0 : index
    %c0_1 = arith.constant 0 : index
    %3 = vector.load %arg2[%c0_0, %c0_1] : memref<8x32xf32, #tpu.memory_space<vmem>>, vector<8x32xf32>
    %cst = arith.constant dense<0.000000e+00> : vector<32xf32>
    %4 = vector.multi_reduction <add>, %3, %cst [0] : vector<8x32xf32> to vector<32xf32>
    %5 = vector.shape_cast %4 : vector<32xf32> to vector<1x32xf32>
    %6 = arith.mulf %3, %3 : vector<8x32xf32>
    %cst_2 = arith.constant dense<0.000000e+00> : vector<32xf32>
    %7 = vector.multi_reduction <add>, %6, %cst_2 [0] : vector<8x32xf32> to vector<32xf32>
    %8 = vector.shape_cast %7 : vector<32xf32> to vector<1x32xf32>
    %c0_3 = arith.constant 0 : index
    %c0_4 = arith.constant 0 : index
    %9 = vector.load %arg3[%c0_3, %c0_4] : memref<1x32xf32, #tpu.memory_space<vmem>>, vector<1x32xf32>
    %10 = vector.broadcast %0 : f32 to vector<1x32xf32>
    %11 = arith.mulf %10, %5 : vector<1x32xf32>
    %12 = arith.addf %9, %11 : vector<1x32xf32>
    %c0_5 = arith.constant 0 : index
    %c0_6 = arith.constant 0 : index
    %13 = vector.load %arg4[%c0_5, %c0_6] : memref<1x32xf32, #tpu.memory_space<vmem>>, vector<1x32xf32>
    %14 = vector.broadcast %0 : f32 to vector<1x32xf32>
    %15 = arith.mulf %14, %8 : vector<1x32xf32>
    %16 = arith.addf %13, %15 : vector<1x32xf32>
    %cst_7 = arith.constant 1.000000e+00 : f32
    %17 = arith.maximumf %1, %cst_7 : f32
    %18 = vector.broadcast %17 : f32 to vector<1x32xf32>
    %19 = arith.divf %12, %18 : vector<1x32xf32>
    %20 = vector.broadcast %17 : f32 to vector<1x32xf32>
    %21 = arith.divf %16, %20 : vector<1x32xf32>
    %22 = arith.mulf %19, %19 : vector<1x32xf32>
    %23 = arith.subf %21, %22 : vector<1x32xf32>
    %24 = math.absf %23 : vector<1x32xf32>
    %25 = math.sqrt %24 : vector<1x32xf32>
    %26 = vector.broadcast %2 : f32 to vector<1x32xf32>
    %27 = arith.maximumf %25, %26 : vector<1x32xf32>
    %cst_8 = arith.constant 1.000000e+00 : f32
    %28 = vector.broadcast %cst_8 : f32 to vector<1x32xf32>
    %29 = arith.divf %28, %27 : vector<1x32xf32>
    %c0_9 = arith.constant 0 : index
    %c0_10 = arith.constant 0 : index
    %30 = vector.load %arg6[%c0_9, %c0_10] : memref<1x32xf32, #tpu.memory_space<vmem>>, vector<1x32xf32>
    tpu.vector_store %arg6[%c0_9, %c0_10], %12 {strides = array<i32>} : memref<1x32xf32, #tpu.memory_space<vmem>>, vector<1x32xf32>,
    %c0_11 = arith.constant 0 : index
    %c0_12 = arith.constant 0 : index
    %31 = vector.load %arg7[%c0_11, %c0_12] : memref<1x32xf32, #tpu.memory_space<vmem>>, vector<1x32xf32>
    tpu.vector_store %arg7[%c0_11, %c0_12], %16 {strides = array<i32>} : memref<1x32xf32, #tpu.memory_space<vmem>>, vector<1x32xf32>,
    %32 = vector.broadcast %19 : vector<1x32xf32> to vector<8x32xf32>
    %33 = arith.subf %3, %32 : vector<8x32xf32>
    %34 = vector.broadcast %29 : vector<1x32xf32> to vector<8x32xf32>
    %35 = arith.mulf %33, %34 : vector<8x32xf32>
    %c0_13 = arith.constant 0 : index
    %c0_14 = arith.constant 0 : index
    %36 = vector.load %arg5[%c0_13, %c0_14] : memref<8x32xf32, #tpu.memory_space<vmem>>, vector<8x32xf32>
    tpu.vector_store %arg5[%c0_13, %c0_14], %35 {strides = array<i32>} : memref<8x32xf32, #tpu.memory_space<vmem>>, vector<8x32xf32>,
    return
  }
  func.func @transform_0(%arg0: i32) -> i32 {
    %c0_i32 = arith.constant 0 : i32
    %c0_i32_0 = arith.constant 0 : i32
    return %c0_i32 : i32
  }
  func.func @transform_1(%arg0: i32) -> (i32, i32) {
    %c0_i32 = arith.constant 0 : i32
    %c0_i32_0 = arith.constant 0 : i32
    %c0_i32_1 = arith.constant 0 : i32
    return %c0_i32, %c0_i32_0 : i32, i32
  }
  func.func @transform_2(%arg0: i32) -> (i32, i32) {
    %c0_i32 = arith.constant 0 : i32
    %c0_i32_0 = arith.constant 0 : i32
    %c0_i32_1 = arith.constant 0 : i32
    return %c0_i32, %c0_i32_0 : i32, i32
  }
  func.func @transform_3(%arg0: i32) -> (i32, i32) {
    %c0_i32 = arith.constant 0 : i32
    %c0_i32_0 = arith.constant 0 : i32
    %c0_i32_1 = arith.constant 0 : i32
    return %c0_i32, %c0_i32_0 : i32, i32
  }
  func.func @transform_4(%arg0: i32) -> (i32, i32) {
    %c0_i32 = arith.constant 0 : i32
    %c0_i32_0 = arith.constant 0 : i32
    %c0_i32_1 = arith.constant 0 : i32
    return %c0_i32, %c0_i32_0 : i32, i32
  }
  func.func @transform_5(%arg0: i32) -> (i32, i32) {
    %c0_i32 = arith.constant 0 : i32
    %c0_i32_0 = arith.constant 0 : i32
    %c0_i32_1 = arith.constant 0 : i32
    return %c0_i32, %c0_i32_0 : i32, i32
  }
  func.func @transform_6(%arg0: i32) -> (i32, i32) {
    %c0_i32 = arith.constant 0 : i32
    %c0_i32_0 = arith.constant 0 : i32
    %c0_i32_1 = arith.constant 0 : i32
    return %c0_i32, %c0_i32_0 : i32, i32
  }
}

</mosaic_0001>

<bundles_post_ra>
// kernel: _normalizer_forward.1
= control target key start
LH: loop header
LB: loop body
LE: loop exit
PB: predicated region body
PF: predicated region fallthrough
CT: control target
= control target key end

     0   :  { %12 = vsyncpa [#allocation4], 0  ;;  %s345_s0 = inlined_call_operand.vmem [shape: f32[3], index: 0, kind: input, shape index: {}]   ;;  %s346_s1 = inlined_call_operand.vmem [shape: f32[8,32], index: 1, kind: input, shape index: {}]   ;;  %s347_s2 = inlined_call_operand.vmem [shape: f32[1,32], index: 2, kind: input, shape index: {}]   ;;  %s348_s3 = inlined_call_operand.vmem [shape: f32[1,32], index: 3, kind: input, shape index: {}]   ;;  %s349_s4 = inlined_call_operand.hbm [shape: f32[8,32], index: 4, kind: output, shape index: {0}]   ;;  %s350_s5 = inlined_call_operand.hbm [shape: f32[1,32], index: 5, kind: output, shape index: {1}]   ;;  %s351_s6 = inlined_call_operand.hbm [shape: f32[1,32], index: 6, kind: output, shape index: {2}]  }
   0x1   :  { %13 = vsyncpa [#allocation3], 0 }
   0x2   :  { %14 = vsyncpa [#allocation7], 0  ;;  %s21_s23 = sshll.u32 %s345_s0, 4  ;;  %s22_s23 = int_to_ptr.vmem [resolvable:$true] %s21_s23 }
   0x3   :  { %s154_s24 = scalar_lea.vmem %s22_s23, 16  ;;  %p159_p1 = scmp.lt.s32.totalorder %s22_s23, %s22_s23 }
   0x4   :  { %p155_p0 = scmp.ne.s32.totalorder %s22_s23, %s154_s24  ;;  %p160_p2 = scmp.lt.s32.totalorder %s154_s24, %s154_s24 }
   0x6   :  { %p161_p3 = por %p160_p2, %p159_p1 }
   0x8   :  { %p162_p4 = pnand %p161_p3, %p155_p0 }
   0xa   :  { %165 = shalt.err (!%p162_p4)
}
   0xb   :  { %s238_s25 = smov [#allocation2]  }
   0xc   :  { %24 = dma.vmem_to_smem %s22_s23, 16, %s238_s25, [#allocation4]  }
   0xd   :  { %232 = dma.done.wait [#allocation4], 16  }
   0xe   :  { %233 = vsyncadd [#allocation4], 4294967280 }
   0xf   :  { %34 = sfence }
  0x10   :  { %s141_s26 = sld [smem:[#allocation2 + $0x1]]  ;;  %v284_v0 = vld [vmem:[%s346_s1] sm:$0xff]  ;;  %vm39_vm0 = vcmask 261120   ;;  %s35_s0 = sld [smem:[#allocation2]]  ;;  %vm81_vm1 = vcmask 253952  }
  0x11   :  { %v40_v1 = vsel %vm39_vm0, %v284_v0, 0.0  ;;  %v47_v2 = vmul.f32 %v284_v0, %v284_v0  ;;  %s239_s29 = smov 1.0   ;;  %v55_v17 = vld [vmem:[%s347_s2] sm:$0x1]  ;;  %s240_s8 = smov [#allocation6]  }
  0x12   :  { %v41_v3 = vrot.slane %v40_v1, 4  ;;  %s115_s9 = sshll.u32 %s240_s8, 4  ;;  %v59_v20 = vld [vmem:[%s348_s3] sm:$0x1]  ;;  %s241_s12 = smov [#allocation8]   ;;  %s116_s9 = int_to_ptr.vmem [resolvable:$true] %s115_s9 }
  0x13   :  { %v48_v4 = vsel %vm39_vm0, %v47_v2, 0.0  ;;  %s125_s13 = sshll.u32 %s241_s12, 4  ;;  %s166_s2 = scalar_lea.vmem %s116_s9, 16  ;;  %s298_s13 = int_to_ptr.vmem [resolvable:$true] %s125_s13 }
  0x14   :  { %v42_v5 = vadd.f32 %v41_v3, %v40_v1  ;;  %v49_v6 = vrot.slane %v48_v4, 4  ;;  %p167_p5 = scmp.ne.s32.totalorder %s116_s9, %s166_s2  ;;  %s170_s14 = scalar_lea.vmem %s116_s9, 32 }
  0x15   :  { %p171_p6 = scmp.lt.s32.totalorder %s116_s9, %s116_s9  ;;  %p172_p7 = scmp.lt.s32.totalorder %s170_s14, %s166_s2 }
  0x16   :  { %v43_v7 = vrot.slane %v42_v5, 2  ;;  %s62_s30 = smax.f32 %s239_s29, %s141_s26  ;;  %v50_v8 = vadd.f32 %v49_v6, %v48_v4  ;;  %v56_v14 = vstv %s35_s0 }
  0x17   :  { %v63_v9 = vstv %s62_s30  ;;  %p173_p8 = por %p172_p7, %p171_p6 }
  0x18   :  { %v44_v10 = vadd.f32 %v43_v7, %v42_v5  ;;  %148 = vrcp.f32 %v63_v9  ;;  %v51_v11 = vrot.slane %v50_v8, 2 }
  0x19   :  { %p174_p9 = pnand %p173_p8, %p167_p5 }
  0x1a   :  { %v45_v12 = vrot.slane %v44_v10, 1  ;;  %v52_v13 = vadd.f32 %v51_v11, %v50_v8 }
  0x1c   :  { %v46_v15 = vadd.f32 %v45_v12, %v44_v10  ;;  %v53_v16 = vrot.slane %v52_v13, 1 }
  0x1e   :  { %v57_v18 = vmul.f32 %v56_v14, %v46_v15  ;;  %v54_v19 = vadd.f32 %v53_v16, %v52_v13 }
  0x20   :  { %v58_v21 = vadd.f32 %v57_v18, %v55_v17  ;;  %v60_v22 = vmul.f32 %v56_v14, %v54_v19 }
  0x22   :  { %v149_v23 = vpop.eup %148  ;;  %82 = vst.msk [vmem:[#allocation6] sm:$0x1] %vm81_vm1, %v58_v21  ;;  %v61_v24 = vadd.f32 %v60_v22, %v59_v20 }
  0x23   :  { %v65_v25 = vmul.f32 %v149_v23, %v58_v21 }
  0x24   :  { %177 = shalt.err (!%p174_p9)
}
  0x25   :  { %s178_s16 = scalar_lea.hbm %s350_s5, 16 }
  0x26   :  { %p179_p10 = scmp.ne.s32.totalorder %s350_s5, %s178_s16  ;;  %p182_p11 = scmp.lt.u32.totalorder %s178_s16, %s350_s5 }
  0x28   :  { %p184_p12 = pnand %p182_p11, %p179_p10 }
  0x2a   :  { %187 = shalt.err (!%p184_p12)
}
  0x2b   :  { %118 = dma.vmem_to_hbm [thread:$0]  %s116_s9, 16, %s350_s5, [#allocation7]   ;;  %v66_v26 = vmul.f32 %v149_v23, %v61_v24  ;;  %83 = vst.msk [vmem:[#allocation8] sm:$0x1] %vm81_vm1, %v61_v24  ;;  %v67_v27 = vmul.f32 %v65_v25, %v65_v25 }
  0x2c   :  { %s188_s23 = scalar_lea.vmem %s298_s13, 16  ;;  %s192_s24 = scalar_lea.vmem %s298_s13, 32 }
  0x2d   :  { %p189_p13 = scmp.ne.s32.totalorder %s298_s13, %s188_s23  ;;  %p193_p0 = scmp.lt.s32.totalorder %s298_s13, %s298_s13 }
  0x2e   :  { %p194_p1 = scmp.lt.s32.totalorder %s192_s24, %s188_s23 }
  0x30   :  { %p195_p2 = por %p194_p1, %p193_p0 }
  0x32   :  { %p196_p3 = pnand %p195_p2, %p189_p13 }
  0x34   :  { %199 = shalt.err (!%p196_p3)
}
  0x35   :  { %s200_s27 = scalar_lea.hbm %s351_s6, 16 }
  0x36   :  { %p201_p4 = scmp.ne.s32.totalorder %s351_s6, %s200_s27  ;;  %p204_p5 = scmp.lt.u32.totalorder %s200_s27, %s351_s6 }
  0x38   :  { %p206_p6 = pnand %p204_p5, %p201_p4 }
  0x3a   :  { %209 = shalt.err (!%p206_p6)
}
  0x3b   :  { %128 = dma.vmem_to_hbm [thread:$0]  %s298_s13, 16, %s351_s6, [#allocation7]   ;;  %v68_v28 = vsub.f32 %v66_v26, %v67_v27  ;;  %v85_v32 = vlaneseq }
  0x3c   :  { %s142_s7 = sld [smem:[#allocation2 + $0x2]]  ;;  %s242_s6 = smov [#allocation5]  }
  0x3d   :  { %v69_v29 = vand.u32 2147483647, %v68_v28  ;;  %v86_v37 = vshrl.u32 %v85_v32, 7  ;;  %s105_s8 = sshll.u32 %s242_s6, 4  ;;  %s106_s8 = int_to_ptr.vmem [resolvable:$true] %s105_s8 }
  0x3e   :  { %s210_s9 = scalar_lea.vmem %s106_s8, 128  ;;  %p215_p8 = scmp.lt.s32.totalorder %s106_s8, %s106_s8 }
  0x3f   :  { %150 = vrsqrt.f32 %v69_v29  ;;  %vm72_vm2 = vcmp.eq.f32.partialorder %v69_v29, inf  ;;  %v75_v31 = vand.u32 2147483648, %v69_v29  ;;  %vm74_vm3 = vcmp.eq.f32.partialorder %v69_v29, 0.0  ;;  %p211_p7 = scmp.ne.s32.totalorder %s106_s8, %s210_s9  ;;  %p216_p9 = scmp.lt.s32.totalorder %s210_s9, %s210_s9 }
  0x40   :  { %v87_v39 = vsub.s32 0, %v86_v37 }
  0x41   :  { %p217_p10 = por %p216_p9, %p215_p8 }
  0x42   :  { %v77_v34 = vstv %s142_s7  ;;  %v88_v40 = vrot.slane %v65_v25, %v87_v39 }
  0x43   :  { %p218_p11 = pnand %p217_p10, %p211_p7 }
  0x44   :  { %v90_v41 = vsub.f32 %v284_v0, %v88_v40 }
  0x49   :  { %v151_v30 = vpop.eup %150 }
  0x4a   :  { %v71_v33 = vmul.f32 %v151_v30, %v69_v29 }
  0x4c   :  { %v73_v35 = vsel %vm72_vm2, %v69_v29, %v71_v33 }
  0x4d   :  { %v76_v36 = vsel %vm74_vm3, %v75_v31, %v73_v35 }
  0x4e   :  { %v78_v38 = vmax.f32 %v76_v36, %v77_v34 }
  0x50   :  { %152 = vrcp.f32 %v78_v38 }
  0x5a   :  { %v153_v42 = vpop.eup %152 }
  0x5b   :  { %v95_v43 = vrot.slane %v153_v42, %v87_v39 }
  0x5d   :  { %v97_v44 = vmul.f32 %v95_v43, %v90_v41 }
  0x5f   :  { %98 = vst.msk [vmem:[#allocation5] sm:$0xff] %vm39_vm0, %v97_v44 }
  0x60   :  { %221 = shalt.err (!%p218_p11)
}
  0x61   :  { %s222_s12 = scalar_lea.hbm %s349_s4, 128 }
  0x62   :  { %p223_p12 = scmp.ne.s32.totalorder %s349_s4, %s222_s12  ;;  %p226_p13 = scmp.lt.u32.totalorder %s222_s12, %s349_s4 }
  0x64   :  { %p228_p0 = pnand %p226_p13, %p223_p12 }
  0x66   :  { %231 = shalt.err (!%p228_p0)
}
  0x67   :  { %108 = dma.vmem_to_hbm [thread:$0]  %s106_s8, 128, %s349_s4, [#allocation3]  }
  0x68   :  { %234 = dma.done.wait [#allocation3], 128  }
  0x69   :  { %235 = vsyncadd [#allocation3], 4294967168 }
  0x6a   :  { %236 = dma.done.wait [#allocation7], 32  }
  0x6b   :  { %237 = vsyncadd [#allocation7], 4294967264 }
  0x6c   :  { %138 = vsyncpa [#allocation3], 1 }
  0x6d   :  { %139 = vsyncpa [#allocation7], 1 }
  0x6e   :  { %140 = vsyncpa [#allocation4], 1 }

</bundles_post_ra>
